<compile_context>
chip_gen: v5e
topology: v5e:2x2
jax: 0.10.0
libtpu: 0.0.40
codegen_flags: <defaults>
</compile_context>

<pallas_src>
import functools

import jax
import jax.numpy as jnp
from jax.experimental import pallas as pl
from jax.experimental.pallas import tpu as pltpu

BN_EPS = 1e-5


def _round_up(x, m):
    return ((x + m - 1) // m) * m


def fine_tune_kernel(x_ref, convw_ref, convb_ref, headw_ref, headb_ref,
                     linw_ref, linb_ref, out_ref, acc_ref,
                     *, spatial, tile_spatial):
    s = pl.program_id(1)
    n_s = pl.num_programs(1)

    # ---- init pooled-sum accumulator at the first spatial tile of this batch row ----
    @pl.when(s == 0)
    def _():
        acc_ref[...] = jnp.zeros_like(acc_ref)

    # ---- backbone stand-in: 1x1 conv + ReLU, partial (per-tile) global-average-pool ----
    x = x_ref[0]                                                            # (TS, C)
    y = jnp.dot(x, convw_ref[...], preferred_element_type=jnp.float32)      # (TS, D) f32
    y = jnp.maximum(y + convb_ref[...], 0.0)

    # mask rows that come from spatial padding so the pooled mean stays unbiased
    row = jax.lax.broadcasted_iota(jnp.int32, (tile_spatial, 1), 0)
    valid = (s * tile_spatial + row) < spatial
    y = jnp.where(valid, y, 0.0)

    acc_ref[...] += jnp.sum(y, axis=0, keepdims=True)                       # (1, D) f32

    # ---- last spatial tile: head (BN + 1/spatial folded) -> ReLU -> classifier ----
    @pl.when(s == n_s - 1)
    def _():
        head_w = headw_ref[...]                                             # (D, D)
        feats = acc_ref[...].astype(head_w.dtype)                           # (1, D)
        h = jnp.dot(feats, head_w, preferred_element_type=jnp.float32)
        h = jnp.maximum(h + headb_ref[...], 0.0)                            # (1, D) f32

        lin_w = linw_ref[...]                                               # (D, NCp)
        out = jnp.dot(h.astype(lin_w.dtype), lin_w,
                      preferred_element_type=jnp.float32) + linb_ref[...]   # (1, NCp)
        out_ref[...] = out.reshape(1, 1, -1)


def fine_tune_forward(x, params, *, tile_spatial=512, compute_dtype=jnp.bfloat16):
    """x: (B, C, H, W) float32 (NCHW, as in PyTorch)."""
    B, C, H, W = x.shape
    D = params["head_w"].shape[0]
    NC = params["lin_w"].shape[0]
    spatial = H * W

    # ---- tiling constants ----
    ts = int(min(_round_up(tile_spatial, 16), _round_up(spatial, 16)))
    s_pad = _round_up(spatial, ts)
    n_s = s_pad // ts

    # ---- layout plumbing (plain JAX, outside the kernel) ----
    # NCHW -> (B, H*W, C): channels land on the lane-dense contraction dim.
    x2 = jnp.transpose(x, (0, 2, 3, 1)).reshape(B, spatial, C)
    if s_pad != spatial:
        x2 = jnp.pad(x2, ((0, 0), (0, s_pad - spatial), (0, 0)))
    x2 = x2.astype(compute_dtype)

    # Pre-transposed weights (no in-kernel transpose / XLU relayout).
    conv_wT = params["conv_w"].T.astype(compute_dtype)                       # (C, D)
    conv_b = params["conv_b"].astype(jnp.float32)                            # (1, D)

    # Fold eval-mode BatchNorm and the 1/spatial of the average pool into the head.
    s_bn = params["bn_gamma"] * jax.lax.rsqrt(params["bn_var"] + BN_EPS)     # (1, D)
    head_wT = (params["head_w"].T * s_bn / spatial).astype(compute_dtype)    # (D, D)
    head_b = (params["bn_beta"] - params["bn_mean"] * s_bn).astype(jnp.float32)  # (1, D)

    # Lane-pad the classifier to a multiple of 128 (unmasked stores), slice back after.
    nc_pad = _round_up(NC, 128)
    lin_wT = jnp.zeros((D, nc_pad), compute_dtype).at[:, :NC].set(
        params["lin_w"].T.astype(compute_dtype))
    lin_b = jnp.zeros((1, nc_pad), jnp.float32).at[:, :NC].set(
        params["lin_b"].astype(jnp.float32))

    kernel = functools.partial(fine_tune_kernel, spatial=spatial, tile_spatial=ts)

    def const(shape):
        # weights/biases: same block every grid step -> fetched once, VMEM-resident
        return pl.BlockSpec(shape, lambda b, s: (0,) * len(shape))

    flops = 2 * B * s_pad * C * D + 2 * B * D * D + 2 * B * D * nc_pad
    bytes_accessed = int(
        x2.size * x2.dtype.itemsize
        + conv_wT.size * conv_wT.dtype.itemsize + conv_b.size * 4
        + head_wT.size * head_wT.dtype.itemsize + head_b.size * 4
        + lin_wT.size * lin_wT.dtype.itemsize + lin_b.size * 4
        + B * nc_pad * 4)
    cost = pl.CostEstimate(flops=flops, transcendentals=0,
                           bytes_accessed=bytes_accessed)

    out = pl.pallas_call(
        kernel,
        out_shape=jax.ShapeDtypeStruct((B, 1, nc_pad), jnp.float32),
        grid=(B, n_s),
        in_specs=[
            pl.BlockSpec((1, ts, C), lambda b, s: (b, s, 0)),   # streamed activation tile
            const((C, D)),          # conv (backbone stand-in) weight, pre-transposed
            const((1, D)),          # conv bias
            const((D, D)),          # head weight (BN scale + 1/spatial folded in)
            const((1, D)),          # head bias (folded BN shift)
            const((D, nc_pad)),     # classifier weight, pre-transposed + lane-padded
            const((1, nc_pad)),     # classifier bias, lane-padded
        ],
        out_specs=pl.BlockSpec((1, 1, nc_pad), lambda b, s: (b, 0, 0)),
        scratch_shapes=[pltpu.VMEM((1, D), jnp.float32)],       # pooled-sum accumulator
        compiler_params=pltpu.CompilerParams(
            dimension_semantics=("parallel", "arbitrary"),
            vmem_limit_bytes=32 * 1024 * 1024),
        cost_estimate=cost,
    )(x2, conv_wT, conv_b, head_wT, head_b, lin_wT, lin_b)

    return out.reshape(B, nc_pad)[:, :NC]


def reference_forward(x, params):
    """Pure-JAX f32 reference mirroring the PyTorch forward (eval-mode BN)."""
    B, C, H, W = x.shape
    x2 = jnp.transpose(x, (0, 2, 3, 1)).reshape(B * H * W, C)
    y = jnp.maximum(x2 @ params["conv_w"].T + params["conv_b"], 0.0)
    feats = jnp.mean(y.reshape(B, H * W, -1), axis=1)
    h = feats @ params["head_w"].T
    h = (h - params["bn_mean"]) / jnp.sqrt(params["bn_var"] + BN_EPS)
    h = jnp.maximum(h * params["bn_gamma"] + params["bn_beta"], 0.0)
    return h @ params["lin_w"].T + params["lin_b"]


def make_params(key, channels, linear_dim, num_classes):
    ks = jax.random.split(key, 8)
    D, C, NC = linear_dim, channels, num_classes
    return {
        "conv_w": 0.2 * jax.random.normal(ks[0], (D, C), jnp.float32),
        "conv_b": 0.1 * jax.random.normal(ks[1], (1, D), jnp.float32),
        "head_w": jax.random.normal(ks[2], (D, D), jnp.float32) / jnp.sqrt(D),
        "bn_gamma": 1.0 + 0.1 * jax.random.normal(ks[3], (1, D), jnp.float32),
        "bn_beta": 0.1 * jax.random.normal(ks[4], (1, D), jnp.float32),
        "bn_mean": 0.05 * jax.random.normal(ks[5], (1, D), jnp.float32),
        "bn_var": jax.random.uniform(ks[6], (1, D), jnp.float32, 0.5, 1.5),
        "lin_w": jax.random.normal(ks[7], (NC, D), jnp.float32) / jnp.sqrt(D),
        "lin_b": jnp.zeros((1, NC), jnp.float32),
    }


if __name__ == "__main__":
    B, C, H, W = 2, 4, 16, 16          # small synthetic NCHW input (spatial = 256)
    LINEAR_DIM, NUM_CLASSES = 32, 16   # scaled-down linear_dim=2048, num_classes=1000

    key = jax.random.PRNGKey(0)
    kx, kp = jax.random.split(key)
    x = jax.random.normal(kx, (B, C, H, W), jnp.float32)
    params = make_params(kp, C, LINEAR_DIM, NUM_CLASSES)

    ref = reference_forward(x, params)

    # f32 compute path: tight numerical check against the reference.
    out_f32 = jax.block_until_ready(
        fine_tune_forward(x, params, tile_spatial=128, compute_dtype=jnp.float32))
    assert out_f32.shape == (B, NUM_CLASSES)
    assert jnp.allclose(out_f32, ref, atol=1e-4, rtol=1e-4)

    # default bf16 matmul path (MXU-friendly on v6e/v7x): looser tolerance.
    out_bf16 = jax.block_until_ready(
        fine_tune_forward(x, params, tile_spatial=128))
    assert out_bf16.shape == (B, NUM_CLASSES)
    assert jnp.allclose(out_bf16, ref, atol=5e-2, rtol=5e-2)

    print("KERNEL_OK")
</pallas_src>

<mosaic_0001>
module attributes {stable_mosaic.version = 11 : i64} {
  func.func @fine_tune_kernel(%arg0: i32, %arg1: i32, %arg2: memref<1x128x4xf32, #tpu.memory_space<vmem>>, %arg3: memref<4x32xf32, #tpu.memory_space<vmem>>, %arg4: memref<1x32xf32, #tpu.memory_space<vmem>>, %arg5: memref<32x32xf32, #tpu.memory_space<vmem>>, %arg6: memref<1x32xf32, #tpu.memory_space<vmem>>, %arg7: memref<32x128xf32, #tpu.memory_space<vmem>>, %arg8: memref<1x128xf32, #tpu.memory_space<vmem>>, %arg9: memref<1x1x128xf32, #tpu.memory_space<vmem>>, %arg10: memref<1x32xf32, #tpu.memory_space<vmem>>) attributes {dimension_semantics = [#tpu.dimension_semantics<parallel>, #tpu.dimension_semantics<arbitrary>], iteration_bounds = array<i64: 2, 2>, scalar_prefetch = 0 : i64, scratch_operands = 1 : i64, tpu.core_type = #tpu.core_type<tc>, window_params = [{transform_indices = @transform_0, window_bounds = array<i64: 1, 128, 4>}, {pipeline_mode = #tpu.pipeline_mode<synchronous>, transform_indices = @transform_1, window_bounds = array<i64: 4, 32>}, {pipeline_mode = #tpu.pipeline_mode<synchronous>, transform_indices = @transform_2, window_bounds = array<i64: 1, 32>}, {pipeline_mode = #tpu.pipeline_mode<synchronous>, transform_indices = @transform_3, window_bounds = array<i64: 32, 32>}, {pipeline_mode = #tpu.pipeline_mode<synchronous>, transform_indices = @transform_4, window_bounds = array<i64: 1, 32>}, {pipeline_mode = #tpu.pipeline_mode<synchronous>, transform_indices = @transform_5, window_bounds = array<i64: 32, 128>}, {pipeline_mode = #tpu.pipeline_mode<synchronous>, transform_indices = @transform_6, window_bounds = array<i64: 1, 128>}, {transform_indices = @transform_7, window_bounds = array<i64: 1, 1, 128>}]} {
    %c0_i32 = arith.constant 0 : i32
    %0 = arith.cmpi eq, %arg1, %c0_i32 : i32
    %1 = arith.extui %0 : i1 to i32
    %c0_i32_0 = arith.constant 0 : i32
    %2 = arith.cmpi ne, %1, %c0_i32_0 : i32
    scf.if %2 {
      %cst_15 = arith.constant 0.000000e+00 : f32
      %30 = vector.broadcast %cst_15 : f32 to vector<1x32xf32>
      %c0_16 = arith.constant 0 : index
      %c0_17 = arith.constant 0 : index
      %31 = vector.load %arg10[%c0_16, %c0_17] : memref<1x32xf32, #tpu.memory_space<vmem>>, vector<1x32xf32>
      tpu.vector_store %arg10[%c0_16, %c0_17], %30 {strides = array<i32>} : memref<1x32xf32, #tpu.memory_space<vmem>>, vector<1x32xf32>,
    } else {
    }
    %c0 = arith.constant 0 : index
    %c0_1 = arith.constant 0 : index
    %c0_2 = arith.constant 0 : index
    %3 = vector.load %arg2[%c0, %c0_1, %c0_2] : memref<1x128x4xf32, #tpu.memory_space<vmem>>, vector<1x128x4xf32>
    %4 = vector.shape_cast %3 : vector<1x128x4xf32> to vector<128x4xf32>
    %c0_3 = arith.constant 0 : index
    %c0_4 = arith.constant 0 : index
    %5 = vector.load %arg3[%c0_3, %c0_4] : memref<4x32xf32, #tpu.memory_space<vmem>>, vector<4x32xf32>
    %cst = arith.constant dense<0.000000e+00> : vector<128x32xf32>
    %6 = tpu.matmul %4, %5, %cst {dimension_numbers = #tpu.dot_dimension_numbers<[1], [0], [0], [1], [0, 0, 1, 1], [], []>} : vector<128x4xf32>, vector<4x32xf32>, vector<128x32xf32> -> vector<128x32xf32>
    %c0_5 = arith.constant 0 : index
    %c0_6 = arith.constant 0 : index
    %7 = vector.load %arg4[%c0_5, %c0_6] : memref<1x32xf32, #tpu.memory_space<vmem>>, vector<1x32xf32>
    %8 = vector.broadcast %7 : vector<1x32xf32> to vector<128x32xf32>
    %9 = arith.addf %6, %8 : vector<128x32xf32>
    %cst_7 = arith.constant 0.000000e+00 : f32
    %10 = vector.broadcast %cst_7 : f32 to vector<128x32xf32>
    %11 = arith.maximumf %9, %10 : vector<128x32xf32>
    %12 = tpu.iota {dimensions = array<i32: 0>} : vector<128x1xi32>
    %c128_i32 = arith.constant 128 : i32
    %13 = arith.muli %arg1, %c128_i32 : i32
    %14 = vector.broadcast %13 : i32 to vector<128x1xi32>
    %15 = arith.addi %14, %12 : vector<128x1xi32>
    %c256_i32 = arith.constant 256 : i32
    %16 = vector.broadcast %c256_i32 : i32 to vector<128x1xi32>
    %17 = arith.cmpi slt, %15, %16 : vector<128x1xi32>
    %cst_8 = arith.constant 0.000000e+00 : f32
    %18 = vector.shape_cast %17 : vector<128x1xi1> to vector<128x1xi1>
    %19 = vector.broadcast %18 : vector<128x1xi1> to vector<128x32xi1>
    %20 = vector.broadcast %cst_8 : f32 to vector<128x32xf32>
    %21 = arith.select %19, %11, %20 : vector<128x32xi1>, vector<128x32xf32>
    %c0_9 = arith.constant 0 : index
    %c0_10 = arith.constant 0 : index
    %22 = vector.load %arg10[%c0_9, %c0_10] : memref<1x32xf32, #tpu.memory_space<vmem>>, vector<1x32xf32>
    %cst_11 = arith.constant dense<0.000000e+00> : vector<32xf32>
    %23 = vector.multi_reduction <add>, %21, %cst_11 [0] : vector<128x32xf32> to vector<32xf32>
    %24 = vector.shape_cast %23 : vector<32xf32> to vector<1x32xf32>
    %25 = arith.addf %22, %24 : vector<1x32xf32>
    %c0_12 = arith.constant 0 : index
    %c0_13 = arith.constant 0 : index
    %26 = vector.load %arg10[%c0_12, %c0_13] : memref<1x32xf32, #tpu.memory_space<vmem>>, vector<1x32xf32>
    tpu.vector_store %arg10[%c0_12, %c0_13], %25 {strides = array<i32>} : memref<1x32xf32, #tpu.memory_space<vmem>>, vector<1x32xf32>,
    %c1_i32 = arith.constant 1 : i32
    %27 = arith.cmpi eq, %arg1, %c1_i32 : i32
    %28 = arith.extui %27 : i1 to i32
    %c0_i32_14 = arith.constant 0 : i32
    %29 = arith.cmpi ne, %28, %c0_i32_14 : i32
    scf.if %29 {
      %c0_15 = arith.constant 0 : index
      %c0_16 = arith.constant 0 : index
      %30 = vector.load %arg5[%c0_15, %c0_16] : memref<32x32xf32, #tpu.memory_space<vmem>>, vector<32x32xf32>
      %c0_17 = arith.constant 0 : index
      %c0_18 = arith.constant 0 : index
      %31 = vector.load %arg10[%c0_17, %c0_18] : memref<1x32xf32, #tpu.memory_space<vmem>>, vector<1x32xf32>
      %cst_19 = arith.constant dense<0.000000e+00> : vector<1x32xf32>
      %32 = tpu.matmul %31, %30, %cst_19 {dimension_numbers = #tpu.dot_dimension_numbers<[1], [0], [0], [1], [0, 0, 1, 1], [], []>} : vector<1x32xf32>, vector<32x32xf32>, vector<1x32xf32> -> vector<1x32xf32>
      %c0_20 = arith.constant 0 : index
      %c0_21 = arith.constant 0 : index
      %33 = vector.load %arg6[%c0_20, %c0_21] : memref<1x32xf32, #tpu.memory_space<vmem>>, vector<1x32xf32>
      %34 = arith.addf %32, %33 : vector<1x32xf32>
      %cst_22 = arith.constant 0.000000e+00 : f32
      %35 = vector.broadcast %cst_22 : f32 to vector<1x32xf32>
      %36 = arith.maximumf %34, %35 : vector<1x32xf32>
      %c0_23 = arith.constant 0 : index
      %c0_24 = arith.constant 0 : index
      %37 = vector.load %arg7[%c0_23, %c0_24] : memref<32x128xf32, #tpu.memory_space<vmem>>, vector<32x128xf32>
      %cst_25 = arith.constant dense<0.000000e+00> : vector<1x128xf32>
      %38 = tpu.matmul %36, %37, %cst_25 {dimension_numbers = #tpu.dot_dimension_numbers<[1], [0], [0], [1], [0, 0, 1, 1], [], []>} : vector<1x32xf32>, vector<32x128xf32>, vector<1x128xf32> -> vector<1x128xf32>
      %c0_26 = arith.constant 0 : index
      %c0_27 = arith.constant 0 : index
      %39 = vector.load %arg8[%c0_26, %c0_27] : memref<1x128xf32, #tpu.memory_space<vmem>>, vector<1x128xf32>
      %40 = arith.addf %38, %39 : vector<1x128xf32>
      %41 = vector.shape_cast %40 : vector<1x128xf32> to vector<1x1x128xf32>
      %c0_28 = arith.constant 0 : index
      %c0_29 = arith.constant 0 : index
      %c0_30 = arith.constant 0 : index
      %42 = vector.load %arg9[%c0_28, %c0_29, %c0_30] : memref<1x1x128xf32, #tpu.memory_space<vmem>>, vector<1x1x128xf32>
      tpu.vector_store %arg9[%c0_28, %c0_29, %c0_30], %41 {strides = array<i32>} : memref<1x1x128xf32, #tpu.memory_space<vmem>>, vector<1x1x128xf32>,
    } else {
    }
    return
  }
  func.func @transform_0(%arg0: i32, %arg1: i32) -> (i32, i32, i32) {
    %c0_i32 = arith.constant 0 : i32
    %c0_i32_0 = arith.constant 0 : i32
    return %arg0, %arg1, %c0_i32 : i32, i32, i32
  }
  func.func @transform_1(%arg0: i32, %arg1: i32) -> (i32, i32) {
    %c0_i32 = arith.constant 0 : i32
    %c0_i32_0 = arith.constant 0 : i32
    %c0_i32_1 = arith.constant 0 : i32
    return %c0_i32, %c0_i32_0 : i32, i32
  }
  func.func @transform_2(%arg0: i32, %arg1: i32) -> (i32, i32) {
    %c0_i32 = arith.constant 0 : i32
    %c0_i32_0 = arith.constant 0 : i32
    %c0_i32_1 = arith.constant 0 : i32
    return %c0_i32, %c0_i32_0 : i32, i32
  }
  func.func @transform_3(%arg0: i32, %arg1: i32) -> (i32, i32) {
    %c0_i32 = arith.constant 0 : i32
    %c0_i32_0 = arith.constant 0 : i32
    %c0_i32_1 = arith.constant 0 : i32
    return %c0_i32, %c0_i32_0 : i32, i32
  }
  func.func @transform_4(%arg0: i32, %arg1: i32) -> (i32, i32) {
    %c0_i32 = arith.constant 0 : i32
    %c0_i32_0 = arith.constant 0 : i32
    %c0_i32_1 = arith.constant 0 : i32
    return %c0_i32, %c0_i32_0 : i32, i32
  }
  func.func @transform_5(%arg0: i32, %arg1: i32) -> (i32, i32) {
    %c0_i32 = arith.constant 0 : i32
    %c0_i32_0 = arith.constant 0 : i32
    %c0_i32_1 = arith.constant 0 : i32
    return %c0_i32, %c0_i32_0 : i32, i32
  }
  func.func @transform_6(%arg0: i32, %arg1: i32) -> (i32, i32) {
    %c0_i32 = arith.constant 0 : i32
    %c0_i32_0 = arith.constant 0 : i32
    %c0_i32_1 = arith.constant 0 : i32
    return %c0_i32, %c0_i32_0 : i32, i32
  }
  func.func @transform_7(%arg0: i32, %arg1: i32) -> (i32, i32, i32) {
    %c0_i32 = arith.constant 0 : i32
    %c0_i32_0 = arith.constant 0 : i32
    %c0_i32_1 = arith.constant 0 : i32
    return %arg0, %c0_i32, %c0_i32_0 : i32, i32, i32
  }
}

</mosaic_0001>

<bundles_post_ra>
// kernel: tpu_custom_call.1
= control target key start
LH: loop header
LB: loop body
LE: loop exit
PB: predicated region body
PF: predicated region fallthrough
CT: control target
= control target key end

     0   :  { %12 = vsyncpa [#allocation4], 0  ;;  %s1280_s0 = inlined_call_operand.vmem [shape: f32[2,256,4], index: 0, kind: input, shape index: {}]   ;;  %s1281_s1 = inlined_call_operand.vmem [shape: f32[4,32], index: 1, kind: input, shape index: {}]   ;;  %s1282_s2 = inlined_call_operand.vmem [shape: f32[1,32], index: 2, kind: input, shape index: {}]   ;;  %s1283_s3 = inlined_call_operand.vmem [shape: f32[32,32], index: 3, kind: input, shape index: {}]   ;;  %s1284_s4 = inlined_call_operand.vmem [shape: f32[1,32], index: 4, kind: input, shape index: {}]   ;;  %s1285_s5 = inlined_call_operand.vmem [shape: f32[32,128], index: 5, kind: input, shape index: {}]   ;;  %s1286_s6 = inlined_call_operand.vmem [shape: f32[1,128], index: 6, kind: input, shape index: {}]   ;;  %s1287_s7 = inlined_call_operand.hbm [shape: f32[2,1,128], index: 7, kind: output, shape index: {}]  }
   0x1   :  { %14 = vsyncpa [#allocation4 + $0x1], 0  ;;  %s999_s24 = smov 0   ;;  %s1001_s25 = smov 0  }
   0x2   :  { %s1003_s26 = smov 0   ;;  %s1005_s27 = smov 0  }
   0x3   :  { %s1007_s28 = smov 0   ;;  %s1009_s29 = smov 0  }
   0x4   :  { %s1011_s30 = smov 0   ;;  %s1013_s8 = smov 0  }
   0x5 LB: > { %s754_s9 = sadd.s32 4294967295, %s956_s8   ;;  %s755_s10 = sadd.s32 4294967294, %s956_s8   ;;  %s956_s8 = sphi %s1013_s8, %s20_s8   ;;  %s952_s30 = sphi %s1011_s30, %s1301_s30   ;;  %s948_s29 = sphi %s1009_s29, %s1300_s29   ;;  %s944_s28 = sphi %s1007_s28, %s1299_s28   ;;  %s940_s27 = sphi %s1005_s27, %s1298_s27   ;;  %s936_s26 = sphi %s1003_s26, %s1297_s26   ;;  %s932_s25 = sphi %s1001_s25, %s1296_s25   ;;  %s928_s24 = sphi %s999_s24, %s1295_s24  }
   0x6   : > { %s29_s11 = sadd.s32 1, %s948_s29  ;;  %s32_s12 = sadd.s32 1, %s952_s30 }
   0x7   : > { %p30_p0 = scmp.ge.s32.totalorder %s29_s11, 2  ;;  %p203_p1 = scmp.ne.s32.totalorder %s936_s26, %s932_s25 }
   0x8   : > { %p204_p2 = scmp.eq.s32.totalorder %s754_s9, 3  ;;  %p209_p4 = scmp.ne.s32.totalorder %s932_s25, %s928_s24 }
   0x9   : > { %s1303_s11 = smov (%p30_p0, %s29_s11), 0  ;;  %s1305_s12 = smov (!%p30_p0, %s32_s12), %s952_s30 }
   0xa   : > { %1289 = sst [smem:[#allocation6_spill]] %s1303_s11  ;;  %p1048_p3 = por %p204_p2, %p203_p1 }
   0xb   : > { %p34_p5 = scmp.ge.s32.totalorder %s1305_s12, 2  ;;  %p210_p6 = scmp.eq.s32.totalorder %s755_s10, 3 }
   0xc   : > { %p758_p7 = scmp.ge.s32.totalorder %s956_s8, 1  ;;  %p259_p8 = scmp.lt.s32.totalorder %s956_s8, 5 }
   0xd   : > { %s1307_s12 = smov (%p34_p5, %s1305_s12), 0  ;;  %p1058_p9 = por %p210_p6, %p209_p4 }
   0xe   : > { %1291 = sst [smem:[#allocation7_spill]] %s1307_s12  ;;  %p260_p10 = pnand %p758_p7, %p259_p8 }
   0xf   : > { %s190_s15 = ssub.s32 %s952_s30, %s1307_s12  ;;  %s193_s16 = sadd.s32 1, %s936_s26 }
  0x10   : > { %p191_p11 = scmp.eq.s32.totalorder %s190_s15, 0  ;;  %263 = sbr.rel (%p260_p10) target bundleno = 509 (0x1fd), region = 48 }
  0x11   : > { %s292_s18 = sand.u32 (!%p260_p10), 1, %s932_s25   ;;  %s759_s19 = sshll.u32 (!%p260_p10), %s940_s27, 4 }
  0x12   : > { %s1066_s17 = scalar_select %p191_p11, %s936_s26, %s193_s16  }
  0x13   : > { %p295_p12 = scmp.lt.s32.totalorder (!%p260_p10), %s944_s28, 1  ;;  %p297_p13 = scmp.lt.s32.totalorder (!%p260_p10), %s759_s19, 31 }
  0x14   : > { %s1079_s16 = scalar_lea.vmem (!%p260_p10), [#allocation3], %s292_s18  ;;  %p762_p0 = scmp.ne.s32.totalorder (!%p260_p10), %s940_s27, 0 }
  0x15   : > { %s296_s20 = scalar_select %p295_p12, %s944_s28, 1 }
  0x16   : > { %s1309_s19 = smov (!%p297_p13, %s759_s19), 31  ;;  %307 = sbr.rel (%p762_p0) target bundleno = 29 (0x1d), region = 52 }
  0x17   : > { %s760_s21 = sshll.u32 %s296_s20, 5 }
  0x18   : > { %s300_s22 = sadd.s32 %s760_s21, %s1309_s19 }
  0x19   : > { %s761_s23 = sshll.u32 %s300_s22, 3 }
  0x1a   : > { %s1075_s15 = scalar_lea.vmem %s1280_s0, %s761_s23 }
  0x1b   : > { %vm308_vm0 = vcmask 253952   ;;  %v958_v0 = vmov 0.0  }
  0x1c   : > { %309 = vst.msk [vmem:[#allocation2] sm:$0x1] %vm308_vm0, %v958_v0 }
  0x1d PF: > { %v326_v1 = vld [vmem:[%s1281_s1] sm:$0xf]  ;;  %vm380_vm1 = vcmask 1043456   ;;  %vm331_vm2 = vcmask 31744   ;;  %v311_v6 = vld [vmem:[%s1075_s15 + $0x8] sm:$0xff]  ;;  %v312_v10 = vld [vmem:[%s1075_s15 + $0x10] sm:$0xff]  ;;  %v465_v20 = vlaneseq }
  0x1e   : > { %v310_v2 = vld [vmem:[%s1075_s15] sm:$0xff]  ;;  %763 = vmatpush.msk.msra.mxu0 %vm380_vm1, %v326_v1  ;;  %786 = vmatpush.msk.msra.mxu1 %vm380_vm1, %v326_v1  ;;  %v315_v7 = vld [vmem:[%s1075_s15 + $0x28] sm:$0xff]  ;;  %v316_v11 = vld [vmem:[%s1075_s15 + $0x30] sm:$0xff]  ;;  %s780_s11 = sshll.u32 %s940_s27, 7  ;;  %vm565_vm6 = vcmask 261120   ;;  %p781_p1 = scmp.ne.s32.totalorder %s940_s27, 1 }
  0x1f   : > { %v314_v3 = vld [vmem:[%s1075_s15 + $0x20] sm:$0xff]  ;;  %764 = vmatmul.msk.f32.vlgmr.msra.gmra.mxu0 %vm331_vm2, %v310_v2  ;;  %787 = vmatpush.msk.msra.mxu2 %vm380_vm1, %v326_v1  ;;  %v319_v8 = vld [vmem:[%s1075_s15 + $0x48] sm:$0xff]  ;;  %v320_v12 = vld [vmem:[%s1075_s15 + $0x50] sm:$0xff]  ;;  %v1117_v21 = vshrl.u32 %v465_v20, 7  ;;  %v1128_v28 = vstv %s780_s11 }
  0x20   : > { %v318_v4 = vld [vmem:[%s1075_s15 + $0x40] sm:$0xff]  ;;  %768 = vmatmul.msk.f32.vlgmr.msra.gmra.mxu1 %vm331_vm2, %v314_v3  ;;  %788 = vmatpush.msk.msra.mxu3 %vm380_vm1, %v326_v1  ;;  %v323_v9 = vld [vmem:[%s1075_s15 + $0x68] sm:$0xff]  ;;  %v324_v13 = vld [vmem:[%s1075_s15 + $0x70] sm:$0xff] }
  0x21   : > { %v322_v5 = vld [vmem:[%s1075_s15 + $0x60] sm:$0xff]  ;;  %772 = vmatmul.msk.f32.vlgmr.msra.gmra.mxu2 %vm331_vm2, %v318_v4  ;;  %v313_v14 = vld [vmem:[%s1075_s15 + $0x18] sm:$0xff]  ;;  %v467_v26 = vadd.s32 8, %v1117_v21  ;;  %v468_v29 = vadd.s32 16, %v1117_v21  ;;  %v484_v33 = vadd.s32 %v1128_v28, %v1117_v21  ;;  %v470_v34 = vadd.s32 32, %v1117_v21 }
  0x22   : > { %776 = vmatmul.msk.f32.vlgmr.msra.gmra.mxu3 %vm331_vm2, %v322_v5  ;;  %v317_v15 = vld [vmem:[%s1075_s15 + $0x38] sm:$0xff]  ;;  %v1126_v27 = vld [vmem:[%s1282_s2] ss:$0 sm:$0xff]  ;;  %v471_v40 = vadd.s32 40, %v1117_v21  ;;  %v469_v42 = vadd.s32 24, %v1117_v21  ;;  %v474_v48 = vadd.s32 64, %v1117_v21 }
  0x23   : > { %v321_v16 = vld [vmem:[%s1075_s15 + $0x58] sm:$0xff]  ;;  %v485_v31 = vadd.s32 %v1128_v28, %v467_v26  ;;  %v486_v36 = vadd.s32 %v1128_v28, %v468_v29  ;;  %vm500_vm4 = vcmp.lt.s32.totalorder %v484_v33, 256  ;;  %v488_v45 = vadd.s32 %v1128_v28, %v470_v34 }
  0x24   : > { %v325_v17 = vld [vmem:[%s1075_s15 + $0x78] sm:$0xff]  ;;  %v472_v49 = vadd.s32 48, %v1117_v21  ;;  %v489_v51 = vadd.s32 %v1128_v28, %v471_v40  ;;  %v487_v52 = vadd.s32 %v1128_v28, %v469_v42  ;;  %v473_v53 = vadd.s32 56, %v1117_v21 }
  0x25   : > { %vm501_vm3 = vcmp.lt.s32.totalorder %v485_v31, 256  ;;  %vm502_vm5 = vcmp.lt.s32.totalorder %v486_v36, 256  ;;  %vm504_vm7 = vcmp.lt.s32.totalorder %v488_v45, 256  ;;  %v492_v59 = vadd.s32 %v1128_v28, %v474_v48 }
  0x26   : > { %v490_v61 = vadd.s32 %v1128_v28, %v472_v49  ;;  %vm505_vm8 = vcmp.lt.s32.totalorder %v489_v51, 256  ;;  %vm503_vm9 = vcmp.lt.s32.totalorder %v487_v52, 256  ;;  %v491_v5 = vadd.s32 %v1128_v28, %v473_v53 }
  0x27   : > { %765 = vmatmul.msk.f32.gmra.mxu0 %vm331_vm2, %v311_v6  ;;  %v477_v20 = vadd.s32 88, %v1117_v21  ;;  %vm508_vm12 = vcmp.lt.s32.totalorder %v492_v59, 256  ;;  %v480_v52 = vadd.s32 112, %v1117_v21 }
  0x28   : > { %769 = vmatmul.msk.f32.gmra.mxu1 %vm331_vm2, %v315_v7  ;;  %vm506_vm10 = vcmp.lt.s32.totalorder %v490_v61, 256  ;;  %vm507_vm11 = vcmp.lt.s32.totalorder %v491_v5, 256 }
  0x29   : > { %773 = vmatmul.msk.f32.gmra.mxu2 %vm331_vm2, %v319_v8 }
  0x2a   : > { %777 = vmatmul.msk.f32.gmra.mxu3 %vm331_vm2, %v323_v9  ;;  %v475_v9 = vadd.s32 72, %v1117_v21 }
  0x2c   : > { %v493_v26 = vadd.s32 %v1128_v28, %v475_v9 }
  0x2e   : > { %vm509_vm13 = vcmp.lt.s32.totalorder %v493_v26, 256 }
  0x2f   : > { %766 = vmatmul.msk.f32.gmra.mxu0 %vm331_vm2, %v312_v10 }
  0x30   : > { %770 = vmatmul.msk.f32.gmra.mxu1 %vm331_vm2, %v316_v11 }
  0x31   : > { %774 = vmatmul.msk.f32.gmra.mxu2 %vm331_vm2, %v320_v12  ;;  %v478_v12 = vadd.s32 96, %v1117_v21 }
  0x32   : > { %778 = vmatmul.msk.f32.gmra.mxu3 %vm331_vm2, %v324_v13 }
  0x33   : > { %v496_v42 = vadd.s32 %v1128_v28, %v478_v12 }
  0x35   : > { %vm512_vm0 = vcmp.lt.s32.totalorder %v496_v42, 256 }
  0x37   : > { %767 = vmatmul.msk.f32.gmra.mxu0 %vm331_vm2, %v313_v14 }
  0x38   : > { %771 = vmatmul.msk.f32.gmra.mxu1 %vm331_vm2, %v317_v15 }
  0x39   : > { %775 = vmatmul.msk.f32.gmra.mxu2 %vm331_vm2, %v321_v16 }
  0x3a   : > { %779 = vmatmul.msk.f32.gmra.mxu3 %vm331_vm2, %v325_v17 }
  0x9c   : > { %v401_v18 = vpop.f32.mrf.mxu0 }
  0x9d   : > { %v413_v19 = vpop.f32.mrf.mxu1  ;;  %v402_v32 = vadd.f32 %v1126_v27, %v401_v18 }
  0x9e   : > { %v414_v47 = vadd.f32 %v1126_v27, %v413_v19  ;;  %v476_v19 = vadd.s32 80, %v1117_v21 }
  0x9f   : > { %v449_v44 = vmax.f32 %v402_v32, 0.0 }
  0xa0   : > { %v453_v58 = vmax.f32 %v414_v47, 0.0  ;;  %v479_v47 = vadd.s32 104, %v1117_v21 }
  0xa1   : > { %v548_v54 = vsel %vm500_vm4, %v449_v44, 0.0  ;;  %vm604_vm4 = vcmask 253952  }
  0xa2   : > { %v566_v3 = vsel %vm565_vm6, %v548_v54, 0.0  ;;  %v552_v10 = vsel %vm504_vm7, %v453_v58, 0.0  ;;  %v481_v54 = vadd.s32 120, %v1117_v21  ;;  %v497_v59 = vadd.s32 %v1128_v28, %v479_v47 }
  0xa3   : > { %v573_v29 = vsel %vm565_vm6, %v552_v10, 0.0  ;;  %v498_v21 = vadd.s32 %v1128_v28, %v480_v52 }
  0xa4   : > { %v404_v22 = vpop.f32.mrf.mxu0  ;;  %v425_v24 = vpop.f32.mrf.mxu2  ;;  %vm513_vm1 = vcmp.lt.s32.totalorder %v497_v59, 256 }
  0xa5   : > { %v416_v23 = vpop.f32.mrf.mxu1  ;;  %v1120_v25 = vpop.f32.mrf.mxu3  ;;  %v405_v30 = vadd.f32 %v1126_v27, %v404_v22  ;;  %v426_v11 = vadd.f32 %v1126_v27, %v425_v24  ;;  %vm514_vm2 = vcmp.lt.s32.totalorder %v498_v21, 256 }
  0xa6   : > { %v417_v56 = vadd.f32 %v1126_v27, %v416_v23  ;;  %v438_v45 = vadd.f32 %v1126_v27, %v1120_v25 }
  0xa7   : > { %v450_v38 = vmax.f32 %v405_v30, 0.0  ;;  %v457_v30 = vmax.f32 %v426_v11, 0.0 }
  0xa8   : > { %v454_v7 = vmax.f32 %v417_v56, 0.0  ;;  %v461_v58 = vmax.f32 %v438_v45, 0.0 }
  0xa9   : > { %v549_v50 = vsel %vm501_vm3, %v450_v38, 0.0  ;;  %v556_v48 = vsel %vm508_vm12, %v457_v30, 0.0 }
  0xaa   : > { %v567_v57 = vsel %vm565_vm6, %v549_v50, 0.0  ;;  %v553_v22 = vsel %vm505_vm8, %v454_v7, 0.0 }
  0xab   : > { %v568_v6 = vadd.f32 %v567_v57, %v566_v3  ;;  %v575_v36 = vsel %vm565_vm6, %v553_v22, 0.0  ;;  %v581_v57 = vsel %vm565_vm6, %v556_v48, 0.0 }
  0xac   : > { %v407_v35 = vpop.f32.mrf.mxu0  ;;  %v428_v41 = vpop.f32.mrf.mxu2 }
  0xad   : > { %v419_v37 = vpop.f32.mrf.mxu1  ;;  %v408_v39 = vadd.f32 %v1126_v27, %v407_v35  ;;  %v1141_v43 = vpop.f32.mrf.mxu3  ;;  %v429_v24 = vadd.f32 %v1126_v27, %v428_v41 }
  0xae   : > { %v420_v0 = vadd.f32 %v1126_v27, %v419_v37  ;;  %v494_v37 = vadd.s32 %v1128_v28, %v476_v19  ;;  %v441_v25 = vadd.f32 %v1126_v27, %v1141_v43 }
  0xaf   : > { %v451_v46 = vmax.f32 %v408_v39, 0.0  ;;  %v495_v39 = vadd.s32 %v1128_v28, %v477_v20  ;;  %v458_v41 = vmax.f32 %v429_v24, 0.0 }
  0xb0   : > { %v455_v16 = vmax.f32 %v420_v0, 0.0  ;;  %vm510_vm14 = vcmp.lt.s32.totalorder %v494_v37, 256  ;;  %v462_v3 = vmax.f32 %v441_v25, 0.0 }
  0xb1   : > { %v550_v55 = vsel %vm502_vm5, %v451_v46, 0.0  ;;  %vm511_vm15 = vcmp.lt.s32.totalorder %v495_v39, 256 }
  0xb2   : > { %v569_v4 = vsel %vm565_vm6, %v550_v55, 0.0  ;;  %v554_v32 = vsel %vm506_vm10, %v455_v16, 0.0  ;;  %v557_v55 = vsel %vm509_vm13, %v458_v41, 0.0 }
  0xb3   : > { %v570_v14 = vadd.f32 %v569_v4, %v568_v6  ;;  %v577_v44 = vsel %vm565_vm6, %v554_v32, 0.0  ;;  %v560_v6 = vsel %vm512_vm0, %v461_v58, 0.0 }
  0xb4   : > { %v410_v60 = vpop.f32.mrf.mxu0  ;;  %v431_v2 = vpop.f32.mrf.mxu2  ;;  %v589_v11 = vsel %vm565_vm6, %v560_v6, 0.0 }
  0xb5   : > { %v422_v62 = vpop.f32.mrf.mxu1  ;;  %v411_v63 = vadd.f32 %v1126_v27, %v410_v60  ;;  %v443_v13 = vpop.f32.mrf.mxu3  ;;  %v432_v34 = vadd.f32 %v1126_v27, %v431_v2  ;;  %v499_v2 = vadd.s32 %v1128_v28, %v481_v54 }
  0xb6   : > { %v423_v1 = vadd.f32 %v1126_v27, %v422_v62  ;;  %v444_v60 = vadd.f32 %v1126_v27, %v443_v13 }
  0xb7   : > { %v452_v8 = vmax.f32 %v411_v63, 0.0  ;;  %v459_v50 = vmax.f32 %v432_v34, 0.0  ;;  %vm515_vm3 = vcmp.lt.s32.totalorder %v499_v2, 256 }
  0xb8   : > { %v456_v17 = vmax.f32 %v423_v1, 0.0  ;;  %v583_v1 = vsel %vm565_vm6, %v557_v55, 0.0 }
  0xb9   : > { %v551_v15 = vsel %vm503_vm9, %v452_v8, 0.0  ;;  %v558_v62 = vsel %vm510_vm14, %v459_v50, 0.0  ;;  %v463_v8 = vmax.f32 %v444_v60, 0.0 }
  0xba   : > { %v571_v18 = vsel %vm565_vm6, %v551_v15, 0.0  ;;  %v555_v33 = vsel %vm507_vm11, %v456_v17, 0.0  ;;  %v585_v4 = vsel %vm565_vm6, %v558_v62, 0.0 }
  0xbb   : > { %v572_v23 = vadd.f32 %v571_v18, %v570_v14  ;;  %v579_v46 = vsel %vm565_vm6, %v555_v33, 0.0  ;;  %v562_v13 = vsel %vm514_vm2, %v463_v8, 0.0 }
  0xbc   : > { %v434_v35 = vpop.f32.mrf.mxu2  ;;  %v593_v16 = vsel %vm565_vm6, %v562_v13, 0.0 }
  0xbd   : > { %v574_v31 = vadd.f32 %v573_v29, %v572_v23  ;;  %v435_v38 = vadd.f32 %v1126_v27, %v434_v35  ;;  %v446_v53 = vpop.f32.mrf.mxu3  ;;  %v564_v29 = vld [vmem:[#allocation2] sm:$0x1] }
  0xbe   : > { %v447_v0 = vadd.f32 %v1126_v27, %v446_v53  ;;  %v561_v27 = vsel %vm513_vm1, %v462_v3, 0.0 }
  0xbf   : > { %v576_v40 = vadd.f32 %v575_v36, %v574_v31  ;;  %v460_v51 = vmax.f32 %v435_v38, 0.0  ;;  %v591_v14 = vsel %vm565_vm6, %v561_v27, 0.0 }
  0xc0   : > { %v464_v9 = vmax.f32 %v447_v0, 0.0 }
  0xc1   : > { %v578_v49 = vadd.f32 %v577_v44, %v576_v40  ;;  %v559_v63 = vsel %vm511_vm15, %v460_v51, 0.0 }
  0xc2   : > { %v587_v5 = vsel %vm565_vm6, %v559_v63, 0.0  ;;  %v563_v28 = vsel %vm515_vm3, %v464_v9, 0.0 }
  0xc3   : > { %v580_v56 = vadd.f32 %v579_v46, %v578_v49  ;;  %v595_v17 = vsel %vm565_vm6, %v563_v28, 0.0 }
  0xc5   : > { %v582_v61 = vadd.f32 %v581_v57, %v580_v56 }
  0xc7   : > { %v584_v43 = vadd.f32 %v583_v1, %v582_v61 }
  0xc9   : > { %v586_v7 = vadd.f32 %v585_v4, %v584_v43 }
  0xcb   : > { %v588_v10 = vadd.f32 %v587_v5, %v586_v7 }
  0xcd   : > { %v590_v12 = vadd.f32 %v589_v11, %v588_v10 }
  0xcf   : > { %v592_v15 = vadd.f32 %v591_v14, %v590_v12 }
  0xd1   : > { %v594_v18 = vadd.f32 %v593_v16, %v592_v15 }
  0xd3   : > { %v596_v19 = vadd.f32 %v595_v17, %v594_v18 }
  0xd5   : > { %v597_v20 = vrot.slane %v596_v19, 4 }
  0xd7   : > { %v598_v22 = vadd.f32 %v597_v20, %v596_v19 }
  0xd9   : > { %v599_v23 = vrot.slane %v598_v22, 2 }
  0xdb   : > { %v600_v24 = vadd.f32 %v599_v23, %v598_v22 }
  0xdd   : > { %v601_v26 = vrot.slane %v600_v24, 1 }
  0xdf   : > { %v602_v30 = vadd.f32 %v601_v26, %v600_v24  ;;  %609 = sbr.rel (%p781_p1) target bundleno = 495 (0x1ef), region = 56 }
  0xe1   : > { %v603_v31 = vadd.f32 %v602_v30, %v564_v29 }
  0xe3   : > { %605 = vst.msk [vmem:[#allocation2] sm:$0x1] %vm604_vm4, %v603_v31 }
  0xe4   : > { %v613_v32 = vld [vmem:[%s1283_s3 + $0x18] sm:$0xff]  ;;  %v612_v33 = vld [vmem:[%s1283_s3 + $0x10] sm:$0xff]  ;;  %v611_v35 = vld [vmem:[%s1283_s3 + $0x8] sm:$0xff] }
  0xe5   : > { %631 = vmatpush.msra.mxu0 %v613_v32  ;;  %v643_v34 = vld [vmem:[%s1285_s5 + $0x18] sm:$0xff]  ;;  %v610_v36 = vld [vmem:[%s1283_s3] sm:$0xff]  ;;  %v642_v38 = vld [vmem:[%s1285_s5 + $0x10] sm:$0xff] }
  0xe6   : > { %660 = vmatpush.msra.mxu1 %v643_v34  ;;  %v641_v39 = vld [vmem:[%s1285_s5 + $0x8] sm:$0xff]  ;;  %v640_v40 = vld [vmem:[%s1285_s5] sm:$0xff] }
  0xe7   : > { %632 = vmatpush.msra.mxu0 %v612_v33  ;;  %v615_v41 = vld [vmem:[%s1284_s4] sm:$0x1] }
  0xe8   : > { %661 = vmatpush.msra.mxu1 %v642_v38  ;;  %v644_v46 = vld [vmem:[%s1286_s6] sm:$0x1] }
  0xe9   : > { %633 = vmatpush.msra.mxu0 %v611_v35 }
  0xea   : > { %v614_v37 = vld [vmem:[#allocation2] sm:$0x1]  ;;  %662 = vmatpush.msra.mxu1 %v641_v39 }
  0xeb   : > { %634 = vmatpush.msra.mxu0 %v610_v36 }
  0xec   : > { %782 = vmatmul.msk.f32.vlgmr.msra.gmra.mxu0 %vm565_vm6, %v614_v37  ;;  %663 = vmatpush.msra.mxu1 %v640_v40 }
 0x169   : > { %v636_v42 = vpop.f32.mrf.mxu0 }
 0x16a   : > { %v637_v44 = vadd.f32 %v636_v42, %v615_v41 }
 0x16c   : > { %v639_v45 = vmax.f32 %v637_v44, 0.0 }
 0x16e   : > { %783 = vmatmul.msk.f32.vlgmr.msra.gmra.mxu1 %vm565_vm6, %v639_v45 }
 0x1eb   : > { %v665_v47 = vpop.f32.mrf.mxu1 }
 0x1ec   : > { %v666_v48 = vadd.f32 %v665_v47, %v644_v46 }
 0x1ee   : > { %668 = vst [vmem:[%s1079_s16] sm:$0x1] %v666_v48 }
 0x1ef PF: > { %s678_s20 = scalar_lea.hbm %s1287_s7, %s944_s28  ;;  %s680_s21 = sshll.u32 %s1079_s16, 4  ;;  %s681_s21 = int_to_ptr.vmem [resolvable:$true] %s680_s21 }
 0x1f0   : > { %s682_s22 = sshll.u32 %s678_s20, 4  ;;  %s670_s23 = scalar_lea.sflag [#allocation4], %s292_s18  ;;  %s683_s22 = int_to_ptr.hbm [resolvable:$true] %s682_s22 }
 0x1f1   : > { %s876_s9 = sshra.s32 %s683_s22, 4  ;;  %s882_s27 = scalar_lea.hbm %s1287_s7, 2  ;;  %s877_s9 = int_to_ptr.hbm [resolvable:$true] %s876_s9 }
 0x1f2   : > { %s878_s10 = scalar_lea.hbm %s877_s9, 1  ;;  %p883_p6 = scmp.lt.s32.totalorder %s877_s9, %s1287_s7 }
 0x1f3   : > { %p879_p2 = scmp.ne.s32.totalorder %s877_s9, %s878_s10  ;;  %p884_p7 = scmp.lt.s32.totalorder %s882_s27, %s878_s10 }
 0x1f5   : > { %p880_p4 = pnand %p879_p2, %p1048_p3  ;;  %p885_p8 = por %p884_p7, %p883_p6 }
 0x1f7   : > { %p881_p5 = pneg %p880_p4 }
 0x1f9   : > { %p886_p10 = pnand %p885_p8, %p881_p5 }
 0x1fb   : > { %889 = shalt.err (!%p886_p10)
}
 0x1fc   : > { %789 = dma.vmem_to_hbm [thread:$0]  (%p1048_p3), %s681_s21, 16, %s683_s22, %s670_s23  }
 0x1fd PF: > { %p795_p11 = scmp.ge.s32.totalorder %s956_s8, 2  ;;  %s694_s28 = sand.u32 1, %s928_s24  }
 0x1fe   : > { %s695_s18 = scalar_lea.sflag [#allocation4], %s694_s28 }
 0x1ff   : > { %p792_p12 = pnand %p795_p11, %p1058_p9 }
 0x201   : > { %p793_p13 = pneg %p792_p12 }
 0x203   : > { %923 = dma.done.wait (%p793_p13), %s695_s18, 16  }
 0x204   : > { %925 = vsyncadd (%p793_p13), %s695_s18, 4294967280  ;;  %s20_s8 = sadd.s32 1, %s956_s8   ;;  %s1293_s13 = sld [smem:[#allocation6_spill]] }
 0x205   : > { %p17_p0 = scmp.ge.s32.totalorder %s20_s8, 6   ;;  %s1294_s16 = sld [smem:[#allocation7_spill]] }
 0x206   : > { %s1295_s24 = smov %s932_s25  ;;  %s1296_s25 = smov %s936_s26 }
 0x207   : > { %s1297_s26 = smov %s1066_s17  ;;  %s1298_s27 = smov %s948_s29 }
 0x208   : > { %s1299_s28 = smov %s952_s30  ;;  %19 = sbr.rel (!%p17_p0) target bundleno = 5 (0x5), region = 91 }
 0x20a   : > { %s1300_s29 = smov %s1293_s13 }
 0x20b   : > { %s1301_s30 = smov %s1294_s16 }
 0x20d   :  { %700 = vsyncpa [#allocation4], 1 }
 0x20e   :  { %702 = vsyncpa [#allocation4 + $0x1], 1 }

</bundles_post_ra>
